<compile_context>
chip_gen: v7x
topology: tpu7x:2x2x1
jax: 0.10.0
libtpu: 0.0.40
codegen_flags: <defaults>
</compile_context>

<pallas_src>
import functools

import jax
import jax.numpy as jnp
from jax import lax
from jax.experimental import pallas as pl
from jax.experimental.pallas import tpu as pltpu

EPS = 1e-5
VMEM_LIMIT_BYTES = 32 * 1024 * 1024   # <= physical VMEM on v5e/v6e/v7x


def _round_up(x, m):
    return (x + m - 1) // m * m


# ----------------------------- Pallas kernels ------------------------------ #

def _conv_pool_kernel(p0_ref, p1_ref, p2_ref, p3_ref, w_ref, b_ref, o_ref):
    """Fused conv GEMM (lane-dense, batch folded) + 2x2 max-pool + bias + tanh.

    p*_ref: (K, Mt) bf16 pooling-corner patch matrices (Mt lanes = batch*space)
    w_ref : (C_out, K) bf16 conv weights (BN scale already folded in)
    b_ref : (C_out, 1) f32 bias/shift
    o_ref : (C_out, Mt) bf16 pooled activation
    """
    w = w_ref[...]
    y = jnp.dot(w, p0_ref[...], preferred_element_type=jnp.float32)
    y = jnp.maximum(y, jnp.dot(w, p1_ref[...],
                               preferred_element_type=jnp.float32))
    y = jnp.maximum(y, jnp.dot(w, p2_ref[...],
                               preferred_element_type=jnp.float32))
    y = jnp.maximum(y, jnp.dot(w, p3_ref[...],
                               preferred_element_type=jnp.float32))
    o_ref[...] = jnp.tanh(y + b_ref[...]).astype(o_ref.dtype)   # f32 epilogue


def _classifier_kernel(x_ref, w1_ref, b1_ref, w2_ref, b2_ref, w3_ref, b3_ref,
                       o_ref):
    """Whole classifier in one kernel; every feature width padded to 128."""
    h = jnp.dot(x_ref[...], w1_ref[...], preferred_element_type=jnp.float32)
    h = jnp.tanh(h + b1_ref[...])
    h = jnp.dot(h.astype(jnp.bfloat16), w2_ref[...],
                preferred_element_type=jnp.float32)
    h = jnp.tanh(h + b2_ref[...])
    h = jnp.dot(h.astype(jnp.bfloat16), w3_ref[...],
                preferred_element_type=jnp.float32)
    o_ref[...] = h + b3_ref[...]


# ----------------------------- Pallas wrappers ------------------------------ #

def _pick_lane_tile(m_total, k, c_out, *, max_lanes=16 * 1024,
                    vmem_budget_bytes=10 * 1024 * 1024):
    """Lane tile for the conv stages: multiple of 128, aims for >=2 grid
    programs when there is enough work (v7x has two TensorCores), and capped
    so 4 double-buffered bf16 corner tiles + the output tile fit a
    conservative VMEM budget on every chip generation."""
    k_pad = _round_up(k, 16)                      # bf16 sublane packing
    c_pad = _round_up(c_out, 16)
    bytes_per_lane = 2 * (4 * k_pad + c_pad) * 2  # 2 pipeline bufs, 2 B/elem
    cap = min(max_lanes, vmem_budget_bytes // bytes_per_lane)
    cap = max(128, cap // 128 * 128)
    if m_total <= 128:
        return 128
    want = _round_up(pl.cdiv(m_total, 2), 128)    # >=2 programs when possible
    return max(128, min(cap, want))


def conv_pool_stage(corners, w_f, b_f):
    """corners: 4 arrays (K, M) bf16; w_f: (C_out, K) bf16; b_f: (C_out,1) f32."""
    k, m_total = corners[0].shape
    c_out = w_f.shape[0]
    mt = _pick_lane_tile(m_total, k, c_out)
    m_pad = _round_up(m_total, mt)
    if m_pad != m_total:
        corners = [jnp.pad(c, ((0, 0), (0, m_pad - m_total))) for c in corners]
    corner_spec = pl.BlockSpec((k, mt), lambda i: (0, i))
    return pl.pallas_call(
        _conv_pool_kernel,
        out_shape=jax.ShapeDtypeStruct((c_out, m_pad), jnp.bfloat16),
        grid=(m_pad // mt,),
        in_specs=[corner_spec, corner_spec, corner_spec, corner_spec,
                  pl.BlockSpec((c_out, k), lambda i: (0, 0)),
                  pl.BlockSpec((c_out, 1), lambda i: (0, 0))],
        out_specs=pl.BlockSpec((c_out, mt), lambda i: (0, i)),
        compiler_params=pltpu.CompilerParams(
            dimension_semantics=("parallel",),
            vmem_limit_bytes=VMEM_LIMIT_BYTES),
    )(*corners, w_f, b_f)


def _pick_batch_tile(n):
    for t in (1024, 512, 256, 128, 64, 32, 16, 8):
        if n % t == 0:
            return t
    return n


def classifier_fused(x, w1, b1, w2, b2, w3, b3):
    n, f = x.shape
    ncp = w3.shape[1]
    tn = _pick_batch_tile(n)

    def full(arr):
        return pl.BlockSpec(arr.shape, lambda i: (0, 0))

    return pl.pallas_call(
        _classifier_kernel,
        out_shape=jax.ShapeDtypeStruct((n, ncp), jnp.float32),
        grid=(n // tn,),
        in_specs=[pl.BlockSpec((tn, f), lambda i: (i, 0)),
                  full(w1), full(b1), full(w2), full(b2), full(w3), full(b3)],
        out_specs=pl.BlockSpec((tn, ncp), lambda i: (i, 0)),
        compiler_params=pltpu.CompilerParams(
            dimension_semantics=("parallel",),
            vmem_limit_bytes=VMEM_LIMIT_BYTES),
    )(x, w1, b1, w2, b2, w3, b3)


# ------------------------------- JAX glue ---------------------------------- #

def corner_patches(x_nchw, k):
    """Im2col split by 2x2 pooling corner, batch folded onto the lane axis.

    Returns ([4 x (C*k*k, N*P*P)], P) where P = pooled output size.
    Corner (pi, pj) holds the patch matrix for conv-output positions
    (2i+pi, 2j+pj); the K axis is ordered (c, kh, kw) to match the PyTorch
    Conv2d weight reshape, the lane axis is ordered (n, i, j).
    """
    n, c, h, _ = x_nchw.shape
    p_out = (h - k + 1) // 2
    kk = c * k * k
    patches = lax.conv_general_dilated_patches(
        x_nchw, (k, k), (1, 1), "VALID")          # (N, C*k*k, 2P, 2P)
    patches = patches.transpose(1, 0, 2, 3)       # (K, N, 2P, 2P)
    corners = []
    for pi in range(2):
        for pj in range(2):
            corners.append(
                patches[:, :, pi::2, pj::2].reshape(kk, n * p_out * p_out))
    return corners, p_out


def fold_params(p, num_classes):
    """Fold eval-mode BatchNorm into weights/biases; pad FC widths to 128."""
    def pad2d(a, rows, cols):
        return jnp.pad(a, ((0, rows - a.shape[0]), (0, cols - a.shape[1])))

    # conv1 + BN2d(6)
    s1 = p["bn1_gamma"] / jnp.sqrt(p["bn1_var"] + EPS)
    w1 = (p["conv1_w"].reshape(6, 25) * s1[:, None]).astype(jnp.bfloat16)
    b1 = ((p["conv1_b"] - p["bn1_mean"]) * s1
          + p["bn1_beta"]).reshape(6, 1).astype(jnp.float32)
    # conv2 (no BN)
    w2 = p["conv2_w"].reshape(16, 150).astype(jnp.bfloat16)
    b2 = p["conv2_b"].reshape(16, 1).astype(jnp.float32)

    # Classifier: zero-pad widths to lane-dense 128 multiples.
    ncp = _round_up(max(num_classes, 1), 128)
    fw1 = pad2d(p["fc1_w"].T, 400, 128).astype(jnp.bfloat16)          # (400,128)
    fb1 = pad2d(p["fc1_b"].reshape(1, 120), 1, 128).astype(jnp.float32)
    s2 = p["bn2_gamma"] / jnp.sqrt(p["bn2_var"] + EPS)
    fw2 = pad2d(p["fc2_w"].T * s2[None, :], 128, 128).astype(jnp.bfloat16)
    fb2 = pad2d(((p["fc2_b"] - p["bn2_mean"]) * s2
                 + p["bn2_beta"]).reshape(1, 84), 1, 128).astype(jnp.float32)
    fw3 = pad2d(p["fc3_w"].T, 128, ncp).astype(jnp.bfloat16)
    fb3 = pad2d(p["fc3_b"].reshape(1, -1), 1, ncp).astype(jnp.float32)
    return dict(w1=w1, b1=b1, w2=w2, b2=b2,
                fw1=fw1, fb1=fb1, fw2=fw2, fb2=fb2, fw3=fw3, fb3=fb3)


@functools.partial(jax.jit, static_argnames=("num_classes",))
def lenet5_bn5_forward(folded, x_nchw, *, num_classes):
    n = x_nchw.shape[0]
    xb = x_nchw.astype(jnp.bfloat16)

    # Stage 1: Conv2d(1,6,5) + BN2d(6) + Tanh + MaxPool2d(2) -> (N, 6, 14, 14)
    c1, p1 = corner_patches(xb, 5)
    y1 = conv_pool_stage(c1, folded["w1"], folded["b1"])       # (6, Mpad1) bf16
    m1 = n * p1 * p1
    y1 = y1[:, :m1].reshape(6, n, p1, p1).transpose(1, 0, 2, 3)

    # Stage 2: Conv2d(6,16,5) + Tanh + MaxPool2d(2)           -> (N, 16, 5, 5)
    c2, p2 = corner_patches(y1, 5)
    y2 = conv_pool_stage(c2, folded["w2"], folded["b2"])       # (16, Mpad2) bf16
    m2 = n * p2 * p2
    # torch.flatten(x, 1) on NCHW == (c, i, j) row-major
    flat = (y2[:, :m2].reshape(16, n, p2 * p2)
            .transpose(1, 0, 2).reshape(n, 16 * p2 * p2))       # (N, 400) bf16

    # Classifier: Linear(400,120)+Tanh, Linear(120,84)+BN1d+Tanh, Linear(84,nc)
    logits = classifier_fused(flat, folded["fw1"], folded["fb1"],
                              folded["fw2"], folded["fb2"],
                              folded["fw3"], folded["fb3"])
    return logits[:, :num_classes]


def init_params(key, num_classes):
    ks = jax.random.split(key, 18)

    def rnd(k, shape, scale=0.1):
        return scale * jax.random.normal(k, shape, dtype=jnp.float32)

    p = {}
    p["conv1_w"] = rnd(ks[0], (6, 1, 5, 5))
    p["conv1_b"] = rnd(ks[1], (6,))
    p["bn1_gamma"] = 1.0 + rnd(ks[2], (6,))
    p["bn1_beta"] = rnd(ks[3], (6,))
    p["bn1_mean"] = rnd(ks[4], (6,))
    p["bn1_var"] = 1.0 + 0.1 * jax.random.uniform(ks[5], (6,), dtype=jnp.float32)
    p["conv2_w"] = rnd(ks[6], (16, 6, 5, 5))
    p["conv2_b"] = rnd(ks[7], (16,))
    p["fc1_w"] = rnd(ks[8], (120, 400))
    p["fc1_b"] = rnd(ks[9], (120,))
    p["fc2_w"] = rnd(ks[10], (84, 120))
    p["fc2_b"] = rnd(ks[11], (84,))
    p["bn2_gamma"] = 1.0 + rnd(ks[12], (84,))
    p["bn2_beta"] = rnd(ks[13], (84,))
    p["bn2_mean"] = rnd(ks[14], (84,))
    p["bn2_var"] = 1.0 + 0.1 * jax.random.uniform(ks[15], (84,), dtype=jnp.float32)
    p["fc3_w"] = rnd(ks[16], (num_classes, 84))
    p["fc3_b"] = rnd(ks[17], (num_classes,))
    return p


if __name__ == "__main__":
    num_classes = 10
    key = jax.random.PRNGKey(0)
    pkey, xkey = jax.random.split(key)
    params = init_params(pkey, num_classes)
    folded = fold_params(params, num_classes)
    # LeNet-5 geometry requires 32x32 single-channel input (16*5*5 flatten).
    x = jax.random.normal(xkey, (2, 1, 32, 32), dtype=jnp.float32)
    logits = lenet5_bn5_forward(folded, x, num_classes=num_classes)
    jax.block_until_ready(logits)
    assert logits.shape == (2, num_classes)
    assert bool(jnp.all(jnp.isfinite(logits)))
    print("KERNEL_OK")
</pallas_src>

<mosaic_0001>
module attributes {stable_mosaic.version = 11 : i64} {
  func.func @_conv_pool_kernel(%arg0: i32, %arg1: memref<25x256xbf16, #tpu.memory_space<vmem>>, %arg2: memref<25x256xbf16, #tpu.memory_space<vmem>>, %arg3: memref<25x256xbf16, #tpu.memory_space<vmem>>, %arg4: memref<25x256xbf16, #tpu.memory_space<vmem>>, %arg5: memref<6x25xbf16, #tpu.memory_space<vmem>>, %arg6: memref<6x1xf32, #tpu.memory_space<vmem>>, %arg7: memref<6x256xbf16, #tpu.memory_space<vmem>>) attributes {dimension_semantics = [#tpu.dimension_semantics<parallel>], iteration_bounds = array<i64: 2>, scalar_prefetch = 0 : i64, scratch_operands = 0 : i64, tpu.core_type = #tpu.core_type<tc>, window_params = [{transform_indices = @transform_0, window_bounds = array<i64: 25, 256>}, {transform_indices = @transform_1, window_bounds = array<i64: 25, 256>}, {transform_indices = @transform_2, window_bounds = array<i64: 25, 256>}, {transform_indices = @transform_3, window_bounds = array<i64: 25, 256>}, {pipeline_mode = #tpu.pipeline_mode<synchronous>, transform_indices = @transform_4, window_bounds = array<i64: 6, 25>}, {pipeline_mode = #tpu.pipeline_mode<synchronous>, transform_indices = @transform_5, window_bounds = array<i64: 6, 1>}, {transform_indices = @transform_6, window_bounds = array<i64: 6, 256>}]} {
    %c0 = arith.constant 0 : index
    %c0_0 = arith.constant 0 : index
    %0 = vector.load %arg5[%c0, %c0_0] : memref<6x25xbf16, #tpu.memory_space<vmem>>, vector<6x25xbf16>
    %c0_1 = arith.constant 0 : index
    %c0_2 = arith.constant 0 : index
    %1 = vector.load %arg1[%c0_1, %c0_2] : memref<25x256xbf16, #tpu.memory_space<vmem>>, vector<25x256xbf16>
    %cst = arith.constant dense<0.000000e+00> : vector<6x256xf32>
    %2 = tpu.matmul %0, %1, %cst {dimension_numbers = #tpu.dot_dimension_numbers<[1], [0], [0], [1], [0, 0, 1, 1], [], []>} : vector<6x25xbf16>, vector<25x256xbf16>, vector<6x256xf32> -> vector<6x256xf32>
    %c0_3 = arith.constant 0 : index
    %c0_4 = arith.constant 0 : index
    %3 = vector.load %arg2[%c0_3, %c0_4] : memref<25x256xbf16, #tpu.memory_space<vmem>>, vector<25x256xbf16>
    %cst_5 = arith.constant dense<0.000000e+00> : vector<6x256xf32>
    %4 = tpu.matmul %0, %3, %cst_5 {dimension_numbers = #tpu.dot_dimension_numbers<[1], [0], [0], [1], [0, 0, 1, 1], [], []>} : vector<6x25xbf16>, vector<25x256xbf16>, vector<6x256xf32> -> vector<6x256xf32>
    %5 = arith.maximumf %2, %4 : vector<6x256xf32>
    %c0_6 = arith.constant 0 : index
    %c0_7 = arith.constant 0 : index
    %6 = vector.load %arg3[%c0_6, %c0_7] : memref<25x256xbf16, #tpu.memory_space<vmem>>, vector<25x256xbf16>
    %cst_8 = arith.constant dense<0.000000e+00> : vector<6x256xf32>
    %7 = tpu.matmul %0, %6, %cst_8 {dimension_numbers = #tpu.dot_dimension_numbers<[1], [0], [0], [1], [0, 0, 1, 1], [], []>} : vector<6x25xbf16>, vector<25x256xbf16>, vector<6x256xf32> -> vector<6x256xf32>
    %8 = arith.maximumf %5, %7 : vector<6x256xf32>
    %c0_9 = arith.constant 0 : index
    %c0_10 = arith.constant 0 : index
    %9 = vector.load %arg4[%c0_9, %c0_10] : memref<25x256xbf16, #tpu.memory_space<vmem>>, vector<25x256xbf16>
    %cst_11 = arith.constant dense<0.000000e+00> : vector<6x256xf32>
    %10 = tpu.matmul %0, %9, %cst_11 {dimension_numbers = #tpu.dot_dimension_numbers<[1], [0], [0], [1], [0, 0, 1, 1], [], []>} : vector<6x25xbf16>, vector<25x256xbf16>, vector<6x256xf32> -> vector<6x256xf32>
    %11 = arith.maximumf %8, %10 : vector<6x256xf32>
    %c0_12 = arith.constant 0 : index
    %c0_13 = arith.constant 0 : index
    %12 = vector.load %arg6[%c0_12, %c0_13] : memref<6x1xf32, #tpu.memory_space<vmem>>, vector<6x1xf32>
    %13 = vector.broadcast %12 : vector<6x1xf32> to vector<6x256xf32>
    %14 = arith.addf %11, %13 : vector<6x256xf32>
    %15 = math.tanh %14 : vector<6x256xf32>
    %16 = arith.truncf %15 : vector<6x256xf32> to vector<6x256xbf16>
    %c0_14 = arith.constant 0 : index
    %c0_15 = arith.constant 0 : index
    %17 = vector.load %arg7[%c0_14, %c0_15] : memref<6x256xbf16, #tpu.memory_space<vmem>>, vector<6x256xbf16>
    tpu.vector_store %arg7[%c0_14, %c0_15], %16 {strides = array<i32>} : memref<6x256xbf16, #tpu.memory_space<vmem>>, vector<6x256xbf16>,
    return
  }
  func.func @transform_0(%arg0: i32) -> (i32, i32) {
    %c0_i32 = arith.constant 0 : i32
    %c0_i32_0 = arith.constant 0 : i32
    return %c0_i32, %arg0 : i32, i32
  }
  func.func @transform_1(%arg0: i32) -> (i32, i32) {
    %c0_i32 = arith.constant 0 : i32
    %c0_i32_0 = arith.constant 0 : i32
    return %c0_i32, %arg0 : i32, i32
  }
  func.func @transform_2(%arg0: i32) -> (i32, i32) {
    %c0_i32 = arith.constant 0 : i32
    %c0_i32_0 = arith.constant 0 : i32
    return %c0_i32, %arg0 : i32, i32
  }
  func.func @transform_3(%arg0: i32) -> (i32, i32) {
    %c0_i32 = arith.constant 0 : i32
    %c0_i32_0 = arith.constant 0 : i32
    return %c0_i32, %arg0 : i32, i32
  }
  func.func @transform_4(%arg0: i32) -> (i32, i32) {
    %c0_i32 = arith.constant 0 : i32
    %c0_i32_0 = arith.constant 0 : i32
    %c0_i32_1 = arith.constant 0 : i32
    return %c0_i32, %c0_i32_0 : i32, i32
  }
  func.func @transform_5(%arg0: i32) -> (i32, i32) {
    %c0_i32 = arith.constant 0 : i32
    %c0_i32_0 = arith.constant 0 : i32
    %c0_i32_1 = arith.constant 0 : i32
    return %c0_i32, %c0_i32_0 : i32, i32
  }
  func.func @transform_6(%arg0: i32) -> (i32, i32) {
    %c0_i32 = arith.constant 0 : i32
    %c0_i32_0 = arith.constant 0 : i32
    return %c0_i32, %arg0 : i32, i32
  }
}

module attributes {stable_mosaic.version = 11 : i64} {
  func.func @_conv_pool_kernel(%arg0: i32, %arg1: memref<150x128xbf16, #tpu.memory_space<vmem>>, %arg2: memref<150x128xbf16, #tpu.memory_space<vmem>>, %arg3: memref<150x128xbf16, #tpu.memory_space<vmem>>, %arg4: memref<150x128xbf16, #tpu.memory_space<vmem>>, %arg5: memref<16x150xbf16, #tpu.memory_space<vmem>>, %arg6: memref<16x1xf32, #tpu.memory_space<vmem>>, %arg7: memref<16x128xbf16, #tpu.memory_space<vmem>>) attributes {dimension_semantics = [#tpu.dimension_semantics<parallel>], iteration_bounds = array<i64: 1>, scalar_prefetch = 0 : i64, scratch_operands = 0 : i64, tpu.core_type = #tpu.core_type<tc>, window_params = [{transform_indices = @transform_0, window_bounds = array<i64: 150, 128>}, {transform_indices = @transform_1, window_bounds = array<i64: 150, 128>}, {transform_indices = @transform_2, window_bounds = array<i64: 150, 128>}, {transform_indices = @transform_3, window_bounds = array<i64: 150, 128>}, {pipeline_mode = #tpu.pipeline_mode<synchronous>, transform_indices = @transform_4, window_bounds = array<i64: 16, 150>}, {pipeline_mode = #tpu.pipeline_mode<synchronous>, transform_indices = @transform_5, window_bounds = array<i64: 16, 1>}, {transform_indices = @transform_6, window_bounds = array<i64: 16, 128>}]} {
    %c0 = arith.constant 0 : index
    %c0_0 = arith.constant 0 : index
    %0 = vector.load %arg5[%c0, %c0_0] : memref<16x150xbf16, #tpu.memory_space<vmem>>, vector<16x150xbf16>
    %c0_1 = arith.constant 0 : index
    %c0_2 = arith.constant 0 : index
    %1 = vector.load %arg1[%c0_1, %c0_2] : memref<150x128xbf16, #tpu.memory_space<vmem>>, vector<150x128xbf16>
    %cst = arith.constant dense<0.000000e+00> : vector<16x128xf32>
    %2 = tpu.matmul %0, %1, %cst {dimension_numbers = #tpu.dot_dimension_numbers<[1], [0], [0], [1], [0, 0, 1, 1], [], []>} : vector<16x150xbf16>, vector<150x128xbf16>, vector<16x128xf32> -> vector<16x128xf32>
    %c0_3 = arith.constant 0 : index
    %c0_4 = arith.constant 0 : index
    %3 = vector.load %arg2[%c0_3, %c0_4] : memref<150x128xbf16, #tpu.memory_space<vmem>>, vector<150x128xbf16>
    %cst_5 = arith.constant dense<0.000000e+00> : vector<16x128xf32>
    %4 = tpu.matmul %0, %3, %cst_5 {dimension_numbers = #tpu.dot_dimension_numbers<[1], [0], [0], [1], [0, 0, 1, 1], [], []>} : vector<16x150xbf16>, vector<150x128xbf16>, vector<16x128xf32> -> vector<16x128xf32>
    %5 = arith.maximumf %2, %4 : vector<16x128xf32>
    %c0_6 = arith.constant 0 : index
    %c0_7 = arith.constant 0 : index
    %6 = vector.load %arg3[%c0_6, %c0_7] : memref<150x128xbf16, #tpu.memory_space<vmem>>, vector<150x128xbf16>
    %cst_8 = arith.constant dense<0.000000e+00> : vector<16x128xf32>
    %7 = tpu.matmul %0, %6, %cst_8 {dimension_numbers = #tpu.dot_dimension_numbers<[1], [0], [0], [1], [0, 0, 1, 1], [], []>} : vector<16x150xbf16>, vector<150x128xbf16>, vector<16x128xf32> -> vector<16x128xf32>
    %8 = arith.maximumf %5, %7 : vector<16x128xf32>
    %c0_9 = arith.constant 0 : index
    %c0_10 = arith.constant 0 : index
    %9 = vector.load %arg4[%c0_9, %c0_10] : memref<150x128xbf16, #tpu.memory_space<vmem>>, vector<150x128xbf16>
    %cst_11 = arith.constant dense<0.000000e+00> : vector<16x128xf32>
    %10 = tpu.matmul %0, %9, %cst_11 {dimension_numbers = #tpu.dot_dimension_numbers<[1], [0], [0], [1], [0, 0, 1, 1], [], []>} : vector<16x150xbf16>, vector<150x128xbf16>, vector<16x128xf32> -> vector<16x128xf32>
    %11 = arith.maximumf %8, %10 : vector<16x128xf32>
    %c0_12 = arith.constant 0 : index
    %c0_13 = arith.constant 0 : index
    %12 = vector.load %arg6[%c0_12, %c0_13] : memref<16x1xf32, #tpu.memory_space<vmem>>, vector<16x1xf32>
    %13 = vector.broadcast %12 : vector<16x1xf32> to vector<16x128xf32>
    %14 = arith.addf %11, %13 : vector<16x128xf32>
    %15 = math.tanh %14 : vector<16x128xf32>
    %16 = arith.truncf %15 : vector<16x128xf32> to vector<16x128xbf16>
    %c0_14 = arith.constant 0 : index
    %c0_15 = arith.constant 0 : index
    %17 = vector.load %arg7[%c0_14, %c0_15] : memref<16x128xbf16, #tpu.memory_space<vmem>>, vector<16x128xbf16>
    tpu.vector_store %arg7[%c0_14, %c0_15], %16 {strides = array<i32>} : memref<16x128xbf16, #tpu.memory_space<vmem>>, vector<16x128xbf16>,
    return
  }
  func.func @transform_0(%arg0: i32) -> (i32, i32) {
    %c0_i32 = arith.constant 0 : i32
    %c0_i32_0 = arith.constant 0 : i32
    return %c0_i32, %arg0 : i32, i32
  }
  func.func @transform_1(%arg0: i32) -> (i32, i32) {
    %c0_i32 = arith.constant 0 : i32
    %c0_i32_0 = arith.constant 0 : i32
    return %c0_i32, %arg0 : i32, i32
  }
  func.func @transform_2(%arg0: i32) -> (i32, i32) {
    %c0_i32 = arith.constant 0 : i32
    %c0_i32_0 = arith.constant 0 : i32
    return %c0_i32, %arg0 : i32, i32
  }
  func.func @transform_3(%arg0: i32) -> (i32, i32) {
    %c0_i32 = arith.constant 0 : i32
    %c0_i32_0 = arith.constant 0 : i32
    return %c0_i32, %arg0 : i32, i32
  }
  func.func @transform_4(%arg0: i32) -> (i32, i32) {
    %c0_i32 = arith.constant 0 : i32
    %c0_i32_0 = arith.constant 0 : i32
    %c0_i32_1 = arith.constant 0 : i32
    return %c0_i32, %c0_i32_0 : i32, i32
  }
  func.func @transform_5(%arg0: i32) -> (i32, i32) {
    %c0_i32 = arith.constant 0 : i32
    %c0_i32_0 = arith.constant 0 : i32
    %c0_i32_1 = arith.constant 0 : i32
    return %c0_i32, %c0_i32_0 : i32, i32
  }
  func.func @transform_6(%arg0: i32) -> (i32, i32) {
    %c0_i32 = arith.constant 0 : i32
    %c0_i32_0 = arith.constant 0 : i32
    return %c0_i32, %arg0 : i32, i32
  }
}

module attributes {stable_mosaic.version = 11 : i64} {
  func.func @_classifier_kernel(%arg0: i32, %arg1: memref<2x400xbf16, #tpu.memory_space<vmem>>, %arg2: memref<400x128xbf16, #tpu.memory_space<vmem>>, %arg3: memref<1x128xf32, #tpu.memory_space<vmem>>, %arg4: memref<128x128xbf16, #tpu.memory_space<vmem>>, %arg5: memref<1x128xf32, #tpu.memory_space<vmem>>, %arg6: memref<128x128xbf16, #tpu.memory_space<vmem>>, %arg7: memref<1x128xf32, #tpu.memory_space<vmem>>, %arg8: memref<2x128xf32, #tpu.memory_space<vmem>>) attributes {dimension_semantics = [#tpu.dimension_semantics<parallel>], iteration_bounds = array<i64: 1>, scalar_prefetch = 0 : i64, scratch_operands = 0 : i64, tpu.core_type = #tpu.core_type<tc>, window_params = [{transform_indices = @transform_0, window_bounds = array<i64: 2, 400>}, {pipeline_mode = #tpu.pipeline_mode<synchronous>, transform_indices = @transform_1, window_bounds = array<i64: 400, 128>}, {pipeline_mode = #tpu.pipeline_mode<synchronous>, transform_indices = @transform_2, window_bounds = array<i64: 1, 128>}, {pipeline_mode = #tpu.pipeline_mode<synchronous>, transform_indices = @transform_3, window_bounds = array<i64: 128, 128>}, {pipeline_mode = #tpu.pipeline_mode<synchronous>, transform_indices = @transform_4, window_bounds = array<i64: 1, 128>}, {pipeline_mode = #tpu.pipeline_mode<synchronous>, transform_indices = @transform_5, window_bounds = array<i64: 128, 128>}, {pipeline_mode = #tpu.pipeline_mode<synchronous>, transform_indices = @transform_6, window_bounds = array<i64: 1, 128>}, {transform_indices = @transform_7, window_bounds = array<i64: 2, 128>}]} {
    %c0 = arith.constant 0 : index
    %c0_0 = arith.constant 0 : index
    %0 = vector.load %arg1[%c0, %c0_0] : memref<2x400xbf16, #tpu.memory_space<vmem>>, vector<2x400xbf16>
    %c0_1 = arith.constant 0 : index
    %c0_2 = arith.constant 0 : index
    %1 = vector.load %arg2[%c0_1, %c0_2] : memref<400x128xbf16, #tpu.memory_space<vmem>>, vector<400x128xbf16>
    %cst = arith.constant dense<0.000000e+00> : vector<2x128xf32>
    %2 = tpu.matmul %0, %1, %cst {dimension_numbers = #tpu.dot_dimension_numbers<[1], [0], [0], [1], [0, 0, 1, 1], [], []>} : vector<2x400xbf16>, vector<400x128xbf16>, vector<2x128xf32> -> vector<2x128xf32>
    %c0_3 = arith.constant 0 : index
    %c0_4 = arith.constant 0 : index
    %3 = vector.load %arg3[%c0_3, %c0_4] : memref<1x128xf32, #tpu.memory_space<vmem>>, vector<1x128xf32>
    %4 = vector.broadcast %3 : vector<1x128xf32> to vector<2x128xf32>
    %5 = arith.addf %2, %4 : vector<2x128xf32>
    %6 = math.tanh %5 : vector<2x128xf32>
    %7 = arith.truncf %6 : vector<2x128xf32> to vector<2x128xbf16>
    %c0_5 = arith.constant 0 : index
    %c0_6 = arith.constant 0 : index
    %8 = vector.load %arg4[%c0_5, %c0_6] : memref<128x128xbf16, #tpu.memory_space<vmem>>, vector<128x128xbf16>
    %cst_7 = arith.constant dense<0.000000e+00> : vector<2x128xf32>
    %9 = tpu.matmul %7, %8, %cst_7 {dimension_numbers = #tpu.dot_dimension_numbers<[1], [0], [0], [1], [0, 0, 1, 1], [], []>} : vector<2x128xbf16>, vector<128x128xbf16>, vector<2x128xf32> -> vector<2x128xf32>
    %c0_8 = arith.constant 0 : index
    %c0_9 = arith.constant 0 : index
    %10 = vector.load %arg5[%c0_8, %c0_9] : memref<1x128xf32, #tpu.memory_space<vmem>>, vector<1x128xf32>
    %11 = vector.broadcast %10 : vector<1x128xf32> to vector<2x128xf32>
    %12 = arith.addf %9, %11 : vector<2x128xf32>
    %13 = math.tanh %12 : vector<2x128xf32>
    %14 = arith.truncf %13 : vector<2x128xf32> to vector<2x128xbf16>
    %c0_10 = arith.constant 0 : index
    %c0_11 = arith.constant 0 : index
    %15 = vector.load %arg6[%c0_10, %c0_11] : memref<128x128xbf16, #tpu.memory_space<vmem>>, vector<128x128xbf16>
    %cst_12 = arith.constant dense<0.000000e+00> : vector<2x128xf32>
    %16 = tpu.matmul %14, %15, %cst_12 {dimension_numbers = #tpu.dot_dimension_numbers<[1], [0], [0], [1], [0, 0, 1, 1], [], []>} : vector<2x128xbf16>, vector<128x128xbf16>, vector<2x128xf32> -> vector<2x128xf32>
    %c0_13 = arith.constant 0 : index
    %c0_14 = arith.constant 0 : index
    %17 = vector.load %arg7[%c0_13, %c0_14] : memref<1x128xf32, #tpu.memory_space<vmem>>, vector<1x128xf32>
    %18 = vector.broadcast %17 : vector<1x128xf32> to vector<2x128xf32>
    %19 = arith.addf %16, %18 : vector<2x128xf32>
    %c0_15 = arith.constant 0 : index
    %c0_16 = arith.constant 0 : index
    %20 = vector.load %arg8[%c0_15, %c0_16] : memref<2x128xf32, #tpu.memory_space<vmem>>, vector<2x128xf32>
    tpu.vector_store %arg8[%c0_15, %c0_16], %19 {strides = array<i32>} : memref<2x128xf32, #tpu.memory_space<vmem>>, vector<2x128xf32>,
    return
  }
  func.func @transform_0(%arg0: i32) -> (i32, i32) {
    %c0_i32 = arith.constant 0 : i32
    %c0_i32_0 = arith.constant 0 : i32
    return %arg0, %c0_i32 : i32, i32
  }
  func.func @transform_1(%arg0: i32) -> (i32, i32) {
    %c0_i32 = arith.constant 0 : i32
    %c0_i32_0 = arith.constant 0 : i32
    %c0_i32_1 = arith.constant 0 : i32
    return %c0_i32, %c0_i32_0 : i32, i32
  }
  func.func @transform_2(%arg0: i32) -> (i32, i32) {
    %c0_i32 = arith.constant 0 : i32
    %c0_i32_0 = arith.constant 0 : i32
    %c0_i32_1 = arith.constant 0 : i32
    return %c0_i32, %c0_i32_0 : i32, i32
  }
  func.func @transform_3(%arg0: i32) -> (i32, i32) {
    %c0_i32 = arith.constant 0 : i32
    %c0_i32_0 = arith.constant 0 : i32
    %c0_i32_1 = arith.constant 0 : i32
    return %c0_i32, %c0_i32_0 : i32, i32
  }
  func.func @transform_4(%arg0: i32) -> (i32, i32) {
    %c0_i32 = arith.constant 0 : i32
    %c0_i32_0 = arith.constant 0 : i32
    %c0_i32_1 = arith.constant 0 : i32
    return %c0_i32, %c0_i32_0 : i32, i32
  }
  func.func @transform_5(%arg0: i32) -> (i32, i32) {
    %c0_i32 = arith.constant 0 : i32
    %c0_i32_0 = arith.constant 0 : i32
    %c0_i32_1 = arith.constant 0 : i32
    return %c0_i32, %c0_i32_0 : i32, i32
  }
  func.func @transform_6(%arg0: i32) -> (i32, i32) {
    %c0_i32 = arith.constant 0 : i32
    %c0_i32_0 = arith.constant 0 : i32
    %c0_i32_1 = arith.constant 0 : i32
    return %c0_i32, %c0_i32_0 : i32, i32
  }
  func.func @transform_7(%arg0: i32) -> (i32, i32) {
    %c0_i32 = arith.constant 0 : i32
    %c0_i32_0 = arith.constant 0 : i32
    return %arg0, %c0_i32 : i32, i32
  }
}

</mosaic_0001>

<bundles_post_ra>
// kernel: lenet5_bn5_forward.3
= control target key start
LH: loop header
LB: loop body
LE: loop exit
PB: predicated region body
PF: predicated region fallthrough
CT: control target
= control target key end

     0   :  { %s1099_s21 = smov 0   ;;  %s1101_s22 = smov 0   ;;  %s1194_s0 = inlined_call_operand.vmem [shape: bf16[25,512], index: 0, kind: input, shape index: {}]   ;;  %s1195_s1 = inlined_call_operand.vmem [shape: bf16[25,512], index: 1, kind: input, shape index: {}]   ;;  %s1196_s2 = inlined_call_operand.vmem [shape: bf16[25,512], index: 2, kind: input, shape index: {}]   ;;  %s1197_s3 = inlined_call_operand.vmem [shape: bf16[25,512], index: 3, kind: input, shape index: {}]   ;;  %s1198_s4 = inlined_call_operand.vmem [shape: bf16[6,25], index: 4, kind: input, shape index: {}]   ;;  %s1199_s5 = inlined_call_operand.vmem [shape: f32[6,1], index: 5, kind: input, shape index: {}]   ;;  %s1200_s6 = inlined_call_operand.vmem [shape: bf16[6,512], index: 6, kind: output, shape index: {}]  }
   0x1   :  { %s1103_s23 = smov 0  }
   0x2 LB: > { %s932_s24 = sadd.s32 4294967295, %s1060_s23   ;;  %s1116_s25 = sadd.s32 1, %s1060_s23   ;;  %s1060_s23 = sphi %s1103_s23, %s1204_s23   ;;  %s1056_s22 = sphi %s1101_s22, %s1203_s22   ;;  %s1052_s21 = sphi %s1099_s21, %s1202_s21  }
   0x3   : > { %s20_s26 = ssub.s32 %s1060_s23, %s1116_s25  ;;  %s23_s27 = sadd.s32 1, %s1056_s22 }
   0x4   : > { %p21_p0 = scmp.eq.s32.totalorder %s20_s26, 0  ;;  %p30_p1 = scmp.ne.s32.totalorder %s1056_s22, %s1052_s21 }
   0x5   : > { %p31_p2 = scmp.eq.s32.totalorder %s1060_s23, 0  ;;  %p935_p4 = scmp.ge.s32.totalorder %s1060_s23, 2 }
   0x6   : > { %s1125_s28 = scalar_select %p21_p0, %s1056_s22, %s23_s27  }
   0x7   : > { %p1127_p3 = por %p31_p2, %p30_p1  ;;  %208 = sbr.rel (%p935_p4) target bundleno = 42 (0x2a), region = 24 }
   0xe   : > { %211 = sbr.rel (!%p1127_p3) target bundleno = 21 (0x15), region = 28  ;;  %s213_s30 = sand.u32 (%p1127_p3), 1, %s1056_s22  }
   0xf   : > { %s978_s7 = sshll.u32 (%p1127_p3), %s1060_s23, 3  ;;  %s936_s8 = sshll.u32 (%p1127_p3), %s213_s30, 5 }
  0x10   : > { %s218_s11 = scalar_lea.vmem (%p1127_p3), %s1194_s0, %s978_s7  ;;  %s215_s12 = scalar_lea.vmem (%p1127_p3), [#allocation2], %s936_s8 }
  0x11   : > { %v252_v0 = vld [vmem:[%s218_s11] sm:$0xff] (%p1127_p3)  ;;  %v254_v1 = vld [vmem:[%s218_s11 + $0x10] sm:$0xff] (%p1127_p3) }
  0x12   : > { %v256_v2 = vld [vmem:[%s218_s11 + $0x20] sm:$0xff] (%p1127_p3)  ;;  %253 = vst [vmem:[%s215_s12] sm:$0xff] (%p1127_p3), %v252_v0  ;;  %255 = vst [vmem:[%s215_s12 + $0x8] sm:$0xff] (%p1127_p3), %v254_v1  ;;  %v258_v3 = vld [vmem:[%s218_s11 + $0x30] sm:$0xff] (%p1127_p3) }
  0x13   : > { %257 = vst [vmem:[%s215_s12 + $0x10] sm:$0xff] (%p1127_p3), %v256_v2  ;;  %259 = vst [vmem:[%s215_s12 + $0x18] sm:$0xff] (%p1127_p3), %v258_v3 }
  0x15 PF: > { %265 = sbr.rel (!%p1127_p3) target bundleno = 28 (0x1c), region = 66  ;;  %s267_s13 = sand.u32 (%p1127_p3), 1, %s1056_s22  }
  0x16   : > { %s979_s14 = sshll.u32 (%p1127_p3), %s1060_s23, 3  ;;  %s939_s15 = sshll.u32 (%p1127_p3), %s267_s13, 5 }
  0x17   : > { %s272_s18 = scalar_lea.vmem (%p1127_p3), %s1195_s1, %s979_s14  ;;  %s269_s19 = scalar_lea.vmem (%p1127_p3), [#allocation3], %s939_s15 }
  0x18   : > { %v306_v4 = vld [vmem:[%s272_s18] sm:$0xff] (%p1127_p3)  ;;  %v308_v5 = vld [vmem:[%s272_s18 + $0x10] sm:$0xff] (%p1127_p3) }
  0x19   : > { %v310_v6 = vld [vmem:[%s272_s18 + $0x20] sm:$0xff] (%p1127_p3)  ;;  %307 = vst [vmem:[%s269_s19] sm:$0xff] (%p1127_p3), %v306_v4  ;;  %309 = vst [vmem:[%s269_s19 + $0x8] sm:$0xff] (%p1127_p3), %v308_v5  ;;  %v312_v7 = vld [vmem:[%s272_s18 + $0x30] sm:$0xff] (%p1127_p3) }
  0x1a   : > { %311 = vst [vmem:[%s269_s19 + $0x10] sm:$0xff] (%p1127_p3), %v310_v6  ;;  %313 = vst [vmem:[%s269_s19 + $0x18] sm:$0xff] (%p1127_p3), %v312_v7 }
  0x1c PF: > { %319 = sbr.rel (!%p1127_p3) target bundleno = 35 (0x23), region = 104  ;;  %s321_s20 = sand.u32 (%p1127_p3), 1, %s1056_s22  }
  0x1d   : > { %s980_s26 = sshll.u32 (%p1127_p3), %s1060_s23, 3  ;;  %s942_s27 = sshll.u32 (%p1127_p3), %s321_s20, 5 }
  0x1e   : > { %s326_s8 = scalar_lea.vmem (%p1127_p3), %s1196_s2, %s980_s26  ;;  %s323_s9 = scalar_lea.vmem (%p1127_p3), [#allocation4], %s942_s27 }
  0x1f   : > { %v360_v8 = vld [vmem:[%s326_s8] sm:$0xff] (%p1127_p3)  ;;  %v362_v9 = vld [vmem:[%s326_s8 + $0x10] sm:$0xff] (%p1127_p3) }
  0x20   : > { %v364_v10 = vld [vmem:[%s326_s8 + $0x20] sm:$0xff] (%p1127_p3)  ;;  %361 = vst [vmem:[%s323_s9] sm:$0xff] (%p1127_p3), %v360_v8  ;;  %363 = vst [vmem:[%s323_s9 + $0x8] sm:$0xff] (%p1127_p3), %v362_v9  ;;  %v366_v11 = vld [vmem:[%s326_s8 + $0x30] sm:$0xff] (%p1127_p3) }
  0x21   : > { %365 = vst [vmem:[%s323_s9 + $0x10] sm:$0xff] (%p1127_p3), %v364_v10  ;;  %367 = vst [vmem:[%s323_s9 + $0x18] sm:$0xff] (%p1127_p3), %v366_v11 }
  0x23 PF: > { %373 = sbr.rel (!%p1127_p3) target bundleno = 42 (0x2a), region = 142  ;;  %s375_s10 = sand.u32 (%p1127_p3), 1, %s1056_s22  }
  0x24   : > { %s981_s11 = sshll.u32 (%p1127_p3), %s1060_s23, 3  ;;  %s945_s12 = sshll.u32 (%p1127_p3), %s375_s10, 5 }
  0x25   : > { %s380_s15 = scalar_lea.vmem (%p1127_p3), %s1197_s3, %s981_s11  ;;  %s377_s16 = scalar_lea.vmem (%p1127_p3), [#allocation5], %s945_s12 }
  0x26   : > { %v414_v12 = vld [vmem:[%s380_s15] sm:$0xff] (%p1127_p3)  ;;  %v416_v13 = vld [vmem:[%s380_s15 + $0x10] sm:$0xff] (%p1127_p3) }
  0x27   : > { %v418_v14 = vld [vmem:[%s380_s15 + $0x20] sm:$0xff] (%p1127_p3)  ;;  %415 = vst [vmem:[%s377_s16] sm:$0xff] (%p1127_p3), %v414_v12  ;;  %417 = vst [vmem:[%s377_s16 + $0x8] sm:$0xff] (%p1127_p3), %v416_v13  ;;  %v420_v15 = vld [vmem:[%s380_s15 + $0x30] sm:$0xff] (%p1127_p3) }
  0x28   : > { %419 = vst [vmem:[%s377_s16 + $0x10] sm:$0xff] (%p1127_p3), %v418_v14  ;;  %421 = vst [vmem:[%s377_s16 + $0x18] sm:$0xff] (%p1127_p3), %v420_v15 }
  0x2a PF: > { %p948_p5 = scmp.ge.s32.totalorder %s1060_s23, 1  ;;  %p426_p6 = scmp.lt.s32.totalorder %s1060_s23, 3 }
  0x2c   : > { %p427_p7 = pnand %p948_p5, %p426_p6 }
  0x2d   : > { %s433_s29 = sand.u32 (!%p427_p7), 1, %s1052_s21   ;;  %vm533_vm0 = vcmask (!%p427_p7), 1043456   ;;  %vm534_vm1 = vcmask (!%p427_p7), 1044480   ;;  %v1062_v16 = vmov (!%p427_p7), 65535   ;;  %v1063_v18 = vmov (!%p427_p7), 0   ;;  %s953_s8 = sshll.u32 (!%p427_p7), %s932_s24, 1 }
  0x2e   : > { %430 = sbr.rel (%p427_p7) target bundleno = 298 (0x12a), region = 180  ;;  %s1163_s17 = sshll.u32 (!%p427_p7), %s433_s29, 5  ;;  %v535_v17 = vsel (!%p427_p7), %vm533_vm0, 4294967295, %v1062_v16  ;;  %575 = vmatprep.mubr.bf16.mxu0 (!%p427_p7), %v1063_v18  ;;  %644 = vmatprep.mubr.bf16.mxu1 (!%p427_p7), %v1063_v18  ;;  %v797_v19 = vld [vmem:[%s1199_s5] sm:$0x3f] (!%p427_p7)  ;;  %vm529_vm2 = vcmask (!%p427_p7), 203776  }
  0x2f   : > { %1009 = vset.pattern.permute.xlu0 (!%p427_p7), %v1063_v18  ;;  %s435_s20 = scalar_lea.vmem (!%p427_p7), [#allocation2], %s1163_s17  ;;  %s442_s21 = scalar_lea.vmem (!%p427_p7), [#allocation3], %s1163_s17  ;;  %v536_v22 = vsel (!%p427_p7), %vm534_vm1, %v535_v17, 0  ;;  %v506_v34 = vld [vmem:[%s1198_s4] sm:$0x7] (!%p427_p7) }
  0x30   : > { %v1010_v20 = vld [vmem:[%s435_s20 + $0x4] ss:$8 sps:$4 sm:$0xff] (!%p427_p7)   ;;  %800 = vperm.xlu0 (!%p427_p7), %1009, %v797_v19   ;;  %v1014_v23 = vld [vmem:[%s435_s20] ss:$8 sps:$4 sm:$0xff] (!%p427_p7)   ;;  %s449_s26 = scalar_lea.vmem (!%p427_p7), [#allocation4], %s1163_s17  ;;  %s456_s7 = scalar_lea.vmem (!%p427_p7), [#allocation5], %s1163_s17 }
  0x31   : > { %v1012_v21 = vld [vmem:[%s442_s21 + $0x4] ss:$8 sps:$4 sm:$0xff] (!%p427_p7)   ;;  %543 = vmatprep.subr.bf16.mxu0 (!%p427_p7), %v1010_v20  ;;  %v1015_v24 = vld [vmem:[%s442_s21] ss:$8 sps:$4 sm:$0xff] (!%p427_p7)   ;;  %p500_p8 = scmp.lt.s32.totalorder (!%p427_p7), %s953_s8, 3 }
  0x32   : > { %612 = vmatprep.subr.bf16.mxu1 (!%p427_p7), %v1012_v21  ;;  %v1016_v25 = vld [vmem:[%s435_s20 + $0x14] ss:$8 sps:$4 sm:$0x1f] (!%p427_p7)   ;;  %544 = vmatpush1.bf16.msra.mxu0 (!%p427_p7), %v1014_v23  ;;  %v1020_v28 = vld [vmem:[%s435_s20 + $0x10] ss:$8 sps:$4 sm:$0x1f] (!%p427_p7)  }
  0x33   : > { %613 = vmatpush1.bf16.msra.mxu1 (!%p427_p7), %v1015_v24  ;;  %v1018_v26 = vld [vmem:[%s442_s21 + $0x14] ss:$8 sps:$4 sm:$0x1f] (!%p427_p7)   ;;  %v541_v27 = vand.u32 (!%p427_p7), %v1016_v25, %v536_v22  ;;  %v1021_v29 = vld [vmem:[%s442_s21 + $0x10] ss:$8 sps:$4 sm:$0x1f] (!%p427_p7)   ;;  %v538_v32 = vand.u32 (!%p427_p7), %v1020_v28, %v536_v22 }
  0x34   : > { %v610_v30 = vand.u32 (!%p427_p7), %v1018_v26, %v536_v22  ;;  %v1024_v31 = vld [vmem:[%s449_s26 + $0x4] ss:$8 sps:$4 sm:$0xff] (!%p427_p7)   ;;  %v607_v33 = vand.u32 (!%p427_p7), %v1021_v29, %v536_v22  ;;  %v1022_v35 = vld [vmem:[%s449_s26] ss:$8 sps:$4 sm:$0xff] (!%p427_p7)  }
  0x35   : > { %545 = vmatprep.subr.bf16.mxu0 %v541_v27  ;;  %v1025_v36 = vld [vmem:[%s456_s7] ss:$8 sps:$4 sm:$0xff]   ;;  %v1027_v37 = vld [vmem:[%s456_s7 + $0x4] ss:$8 sps:$4 sm:$0xff]   ;;  %s1206_s8 = smov (!%p500_p8, %s953_s8), 3 }
  0x36   : > { %614 = vmatprep.subr.bf16.mxu1 %v610_v30  ;;  %546 = vmatpush1.bf16.msra.mxu0 %v538_v32  ;;  %v1028_v38 = vld [vmem:[%s449_s26 + $0x10] ss:$8 sps:$4 sm:$0x1f]   ;;  %v1030_v39 = vld [vmem:[%s449_s26 + $0x14] ss:$8 sps:$4 sm:$0x1f]  }
  0x37   : > { %615 = vmatpush1.bf16.msra.mxu1 %v607_v33  ;;  %683 = vmatprep.subr.bf16.mxu0 %v1024_v31  ;;  %v1031_v40 = vld [vmem:[%s456_s7 + $0x10] ss:$8 sps:$4 sm:$0x1f]   ;;  %v681_v41 = vand.u32 %v1030_v39, %v536_v22  ;;  %v1033_v42 = vld [vmem:[%s456_s7 + $0x14] ss:$8 sps:$4 sm:$0x1f]   ;;  %v678_v44 = vand.u32 %v1028_v38, %v536_v22 }
  0x38   : > { %754 = vmatprep.subr.bf16.mxu1 %v1027_v37  ;;  %v752_v43 = vand.u32 %v1033_v42, %v536_v22  ;;  %v749_v45 = vand.u32 %v1031_v40, %v536_v22  ;;  %s954_s9 = sshll.u32 %s1206_s8, 2 }
  0x39   : > { %959 = vmatmul.mubr.msk.bf16.vlgmr.msra.gmra.mrb[0].mxu0 %vm529_vm2, %v506_v34  ;;  %s503_s12 = scalar_lea.vmem %s1200_s6, %s954_s9 }
  0x3a   : > { %964 = vmatmul.mubr.msk.bf16.vlgmr.msra.gmra.mrb[0].mxu1 %vm529_vm2, %v506_v34  ;;  %684 = vmatpush1.bf16.msra.mxu0 %v1022_v35 }
  0x3b   : > { %755 = vmatpush1.bf16.msra.mxu1 %v1025_v36  ;;  %685 = vmatprep.subr.bf16.mxu0 %v681_v41 }
  0x3c   : > { %715 = vmatprep.mubr.bf16.mxu0 %v1063_v18  ;;  %756 = vmatprep.subr.bf16.mxu1 %v752_v43 }
  0x3d   : > { %786 = vmatprep.mubr.bf16.mxu1 %v1063_v18 }
  0x3e   : > { %686 = vmatpush1.bf16.msra.mxu0 %v678_v44 }
  0x3f   : > { %757 = vmatpush1.bf16.msra.mxu1 %v749_v45 }
  0x41   : > { %969 = vmatmul.mubr.msk.bf16.vlgmr.msra.gmra.mrb[4].mxu0 %vm529_vm2, %v506_v34 }
  0x42   : > { %974 = vmatmul.mubr.msk.bf16.vlgmr.msra.gmra.mrb[4].mxu1 %vm529_vm2, %v506_v34 }
  0xaf   : > { %v801_v56 = vpop.permute.xlu0 %800 }
 0x10c   : > { %v577_v46 = vpop.f32.mrb[0].mxu0 }
 0x10d   : > { %v646_v47 = vpop.f32.mrb[0].mxu1  ;;  %v579_v49 = vpop.f32.mrb[1].mxu0 }
 0x10e   : > { %v653_v48 = vmax.f32 %v577_v46, %v646_v47  ;;  %v648_v50 = vpop.f32.mrb[1].mxu1  ;;  %v581_v52 = vpop.f32.mrb[2].mxu0 }
 0x10f   : > { %v654_v51 = vmax.f32 %v579_v49, %v648_v50  ;;  %v650_v53 = vpop.f32.mrb[2].mxu1  ;;  %v582_v54 = vpop.f32.mrb[3].mxu0 }
 0x110   : > { %v651_v55 = vpop.f32.mrb[3].mxu1 }
 0x114   : > { %v717_v57 = vpop.f32.mrb[4].mxu0 }
 0x115   : > { %v788_v58 = vpop.f32.mrb[4].mxu1  ;;  %v724_v59 = vmax.f32 %v653_v48, %v717_v57  ;;  %v719_v60 = vpop.f32.mrb[5].mxu0 }
 0x116   : > { %v790_v61 = vpop.f32.mrb[5].mxu1  ;;  %v725_v62 = vmax.f32 %v654_v51, %v719_v60  ;;  %v721_v63 = vpop.f32.mrb[6].mxu0 }
 0x117   : > { %v792_v0 = vpop.f32.mrb[6].mxu1  ;;  %v795_v1 = vmax.f32 %v724_v59, %v788_v58  ;;  %v722_v2 = vpop.f32.mrb[7].mxu0 }
 0x118   : > { %v793_v3 = vpop.f32.mrb[7].mxu1  ;;  %v796_v4 = vmax.f32 %v725_v62, %v790_v61 }
 0x119   : > { %v803_v5 = vadd.f32 %v801_v56, %v795_v1 }
 0x11a   : > { %v804_v6 = vadd.f32 %v801_v56, %v796_v4 }
 0x11b   : > { %1034 = vtanh.f32 %v803_v5 }
 0x11c   : > { %1036 = vtanh.f32 %v804_v6 }
 0x125   : > { %v1035_v7 = vpop.eup %1034 }
 0x126   : > { %v1037_v8 = vpop.eup %1036 }
 0x127   : > { %v982_v9 = vpack.c.bf16 %v1037_v8, %v1035_v7 }
 0x129   : > { %815 = vst [vmem:[%s503_s12] sm:$0x77] %v982_v9 }
 0x12a PF: > { %p13_p9 = scmp.ge.s32.totalorder %s1116_s25, 4   ;;  %s1202_s21 = smov %s1056_s22 }
 0x12b   : > { %s1203_s22 = smov %s1125_s28  ;;  %s1204_s23 = smov %s1116_s25 }
 0x12c   :  { %15 = sbr.rel (!%p13_p9) target bundleno = 2 (0x2), region = 255 }

// kernel: lenet5_bn5_forward.4
= control target key start
LH: loop header
LB: loop body
LE: loop exit
PB: predicated region body
PF: predicated region fallthrough
CT: control target
= control target key end

     0   :  { %v660_v0 = vmov 0   ;;  %vm111_vm0 = vcmask 179200   ;;  %vm115_vm1 = vcmask 1042432   ;;  %s886_s0 = inlined_call_operand.vmem [shape: bf16[150,128], index: 0, kind: input, shape index: {}]   ;;  %s887_s1 = inlined_call_operand.vmem [shape: bf16[150,128], index: 1, kind: input, shape index: {}]   ;;  %s888_s4 = inlined_call_operand.vmem [shape: bf16[16,150], index: 4, kind: input, shape index: {}]   ;;  %s889_s2 = inlined_call_operand.vmem [shape: bf16[150,128], index: 2, kind: input, shape index: {}]   ;;  %s890_s3 = inlined_call_operand.vmem [shape: bf16[150,128], index: 3, kind: input, shape index: {}]   ;;  %s891_s5 = inlined_call_operand.vmem [shape: f32[16,1], index: 5, kind: input, shape index: {}]   ;;  %s892_s6 = inlined_call_operand.vmem [shape: bf16[16,128], index: 6, kind: output, shape index: {}]  }
   0x1   :  { %119 = vmatprep.subr.bf16.mxu0 %v660_v0  ;;  %239 = vmatprep.subr.bf16.mxu1 %v660_v0  ;;  %v613_v1 = vld [vmem:[%s886_s0] sm:$0xff]   ;;  %v615_v3 = vld [vmem:[%s886_s0 + $0x8] sm:$0xff]   ;;  %v617_v5 = vld [vmem:[%s886_s0 + $0x10] sm:$0xff]  }
   0x2   :  { %v614_v2 = vld [vmem:[%s887_s1] sm:$0xff]   ;;  %612 = vset.pattern.permute.xlu0 %v660_v0  ;;  %120 = vmatpush1.bf16.msra.mxu0 %v613_v1  ;;  %v616_v4 = vld [vmem:[%s887_s1 + $0x8] sm:$0xff]   ;;  %v618_v6 = vld [vmem:[%s887_s1 + $0x10] sm:$0xff]  }
   0x3   :  { %240 = vmatpush1.bf16.msra.mxu1 %v614_v2  ;;  %121 = vmatprep.subr.bf16.mxu0 %v660_v0  ;;  %v619_v7 = vld [vmem:[%s886_s0 + $0x18] sm:$0xff]   ;;  %v621_v9 = vld [vmem:[%s886_s0 + $0x20] sm:$0xff]   ;;  %v623_v11 = vld [vmem:[%s886_s0 + $0x28] sm:$0xff]  }
   0x4   :  { %241 = vmatprep.subr.bf16.mxu1 %v660_v0  ;;  %v620_v8 = vld [vmem:[%s887_s1 + $0x18] sm:$0xff]   ;;  %v622_v10 = vld [vmem:[%s887_s1 + $0x20] sm:$0xff]   ;;  %v624_v12 = vld [vmem:[%s887_s1 + $0x28] sm:$0xff]  }
   0x5   :  { %v633_v13 = vld [vmem:[%s888_s4 + $0x4] ss:$8 sps:$4 sm:$0xff]   ;;  %v625_v14 = vld [vmem:[%s886_s0 + $0x30] sm:$0xff]   ;;  %v627_v16 = vld [vmem:[%s886_s0 + $0x38] sm:$0xff]  }
   0x6   :  { %122 = vmatpush1.bf16.msra.mxu0 %v615_v3  ;;  %568 = vmatprep.mubr.msk.bf16.mxu0 %vm111_vm0, %v633_v13  ;;  %v626_v15 = vld [vmem:[%s887_s1 + $0x30] sm:$0xff]   ;;  %v628_v17 = vld [vmem:[%s887_s1 + $0x38] sm:$0xff]   ;;  %v631_v18 = vld [vmem:[%s886_s0 + $0x48] ss:$0 sps:$4 sm:$0x77]  }
   0x7   :  { %242 = vmatpush1.bf16.msra.mxu1 %v616_v4  ;;  %123 = vmatprep.subr.bf16.mxu0 %v660_v0  ;;  %v629_v19 = vld [vmem:[%s886_s0 + $0x40] sm:$0xff]   ;;  %v632_v20 = vld [vmem:[%s887_s1 + $0x48] ss:$0 sps:$4 sm:$0x77]   ;;  %v117_v22 = vsel %vm115_vm1, %v631_v18, 0  ;;  %v640_v31 = vld [vmem:[%s889_s2 + $0x10] sm:$0xff]  }
   0x8   :  { %243 = vmatprep.subr.bf16.mxu1 %v660_v0  ;;  %579 = vmatprep.mubr.msk.bf16.mxu1 %vm111_vm0, %v633_v13  ;;  %v630_v21 = vld [vmem:[%s887_s1 + $0x40] sm:$0xff]   ;;  %v237_v23 = vsel %vm115_vm1, %v632_v20, 0  ;;  %v638_v28 = vld [vmem:[%s889_s2 + $0x8] sm:$0xff]   ;;  %v641_v32 = vld [vmem:[%s890_s3 + $0x10] sm:$0xff]  }
   0x9   :  { %v787_v24 = vld [vmem:[%s888_s4] ss:$8 sps:$4 sm:$0xff]   ;;  %v642_v33 = vld [vmem:[%s889_s2 + $0x18] sm:$0xff]   ;;  %v648_v39 = vld [vmem:[%s889_s2 + $0x30] sm:$0xff]  }
   0xa   :  { %124 = vmatpush1.bf16.msra.mxu0 %v617_v5  ;;  %v636_v25 = vld [vmem:[%s889_s2] sm:$0xff]   ;;  %v527_v29 = vld [vmem:[%s891_s5 + $0x8] sm:$0xff]  ;;  %v643_v34 = vld [vmem:[%s890_s3 + $0x18] sm:$0xff]  }
   0xb   :  { %244 = vmatpush1.bf16.msra.mxu1 %v618_v6  ;;  %125 = vmatprep.subr.bf16.mxu0 %v660_v0  ;;  %v637_v26 = vld [vmem:[%s890_s3] sm:$0xff]   ;;  %v639_v30 = vld [vmem:[%s890_s3 + $0x8] sm:$0xff]   ;;  %v649_v40 = vld [vmem:[%s890_s3 + $0x30] sm:$0xff]  }
   0xc   :  { %245 = vmatprep.subr.bf16.mxu1 %v660_v0  ;;  %v526_v27 = vld [vmem:[%s891_s5] sm:$0xff]  ;;  %v646_v37 = vld [vmem:[%s889_s2 + $0x28] sm:$0xff]   ;;  %v650_v41 = vld [vmem:[%s889_s2 + $0x38] sm:$0xff]  }
   0xd   :  { %530 = vperm.xlu0 %612, %v526_v27   ;;  %v644_v35 = vld [vmem:[%s889_s2 + $0x20] sm:$0xff]   ;;  %v647_v38 = vld [vmem:[%s890_s3 + $0x28] sm:$0xff]   ;;  %v651_v42 = vld [vmem:[%s890_s3 + $0x38] sm:$0xff]  }
   0xe   :  { %126 = vmatpush1.bf16.msra.mxu0 %v619_v7  ;;  %v645_v36 = vld [vmem:[%s890_s3 + $0x20] sm:$0xff]   ;;  %v654_v45 = vld [vmem:[%s889_s2 + $0x48] ss:$0 sps:$4 sm:$0x77]  }
   0xf   :  { %246 = vmatpush1.bf16.msra.mxu1 %v620_v8  ;;  %127 = vmatprep.subr.bf16.mxu0 %v660_v0  ;;  %v652_v43 = vld [vmem:[%s889_s2 + $0x40] sm:$0xff]   ;;  %v655_v46 = vld [vmem:[%s890_s3 + $0x48] ss:$0 sps:$4 sm:$0x77]   ;;  %v359_v47 = vsel %vm115_vm1, %v654_v45, 0 }
  0x10   :  { %247 = vmatprep.subr.bf16.mxu1 %v660_v0  ;;  %v653_v44 = vld [vmem:[%s890_s3 + $0x40] sm:$0xff]   ;;  %v481_v48 = vsel %vm115_vm1, %v655_v46, 0 }
  0x11   :  { %535 = vperm.xlu0 %612, %v527_v29  }
  0x12   :  { %128 = vmatpush1.bf16.msra.mxu0 %v621_v9 }
  0x13   :  { %248 = vmatpush1.bf16.msra.mxu1 %v622_v10  ;;  %129 = vmatprep.subr.bf16.mxu0 %v660_v0 }
  0x14   :  { %249 = vmatprep.subr.bf16.mxu1 %v660_v0 }
  0x16   :  { %130 = vmatpush1.bf16.msra.mxu0 %v623_v11 }
  0x17   :  { %250 = vmatpush1.bf16.msra.mxu1 %v624_v12  ;;  %131 = vmatprep.subr.bf16.mxu0 %v660_v0 }
  0x18   :  { %251 = vmatprep.subr.bf16.mxu1 %v660_v0 }
  0x1a   :  { %132 = vmatpush1.bf16.msra.mxu0 %v625_v14 }
  0x1b   :  { %252 = vmatpush1.bf16.msra.mxu1 %v626_v15  ;;  %133 = vmatprep.subr.bf16.mxu0 %v660_v0 }
  0x1c   :  { %253 = vmatprep.subr.bf16.mxu1 %v660_v0 }
  0x1e   :  { %134 = vmatpush1.bf16.msra.mxu0 %v627_v16 }
  0x1f   :  { %254 = vmatpush1.bf16.msra.mxu1 %v628_v17  ;;  %135 = vmatprep.subr.bf16.mxu0 %v660_v0 }
  0x20   :  { %255 = vmatprep.subr.bf16.mxu1 %v660_v0 }
  0x22   :  { %136 = vmatpush1.bf16.msra.mxu0 %v629_v19 }
  0x23   :  { %256 = vmatpush1.bf16.msra.mxu1 %v630_v21  ;;  %137 = vmatprep.subr.bf16.mxu0 %v660_v0 }
  0x24   :  { %257 = vmatprep.subr.bf16.mxu1 %v660_v0 }
  0x26   :  { %138 = vmatpush1.bf16.msra.mxu0 %v117_v22 }
  0x27   :  { %258 = vmatpush1.bf16.msra.mxu1 %v237_v23  ;;  %361 = vmatprep.subr.bf16.mxu0 %v660_v0 }
  0x28   :  { %483 = vmatprep.subr.bf16.mxu1 %v660_v0 }
  0x29   :  { %152 = vmatmul.mubr.bf16.vlgmr.msra.gmra.mrb[0].mxu0 %v787_v24 }
  0x2a   :  { %272 = vmatmul.mubr.bf16.vlgmr.msra.gmra.mrb[0].mxu1 %v787_v24  ;;  %362 = vmatpush1.bf16.msra.mxu0 %v636_v25 }
  0x2b   :  { %484 = vmatpush1.bf16.msra.mxu1 %v637_v26  ;;  %363 = vmatprep.subr.bf16.mxu0 %v660_v0 }
  0x2c   :  { %485 = vmatprep.subr.bf16.mxu1 %v660_v0  ;;  %590 = vmatprep.mubr.msk.bf16.mxu0 %vm111_vm0, %v633_v13 }
  0x2d   :  { %601 = vmatprep.mubr.msk.bf16.mxu1 %vm111_vm0, %v633_v13 }
  0x2e   :  { %364 = vmatpush1.bf16.msra.mxu0 %v638_v28 }
  0x2f   :  { %486 = vmatpush1.bf16.msra.mxu1 %v639_v30  ;;  %365 = vmatprep.subr.bf16.mxu0 %v660_v0 }
  0x30   :  { %487 = vmatprep.subr.bf16.mxu1 %v660_v0 }
  0x32   :  { %366 = vmatpush1.bf16.msra.mxu0 %v640_v31 }
  0x33   :  { %488 = vmatpush1.bf16.msra.mxu1 %v641_v32  ;;  %367 = vmatprep.subr.bf16.mxu0 %v660_v0 }
  0x34   :  { %489 = vmatprep.subr.bf16.mxu1 %v660_v0 }
  0x36   :  { %368 = vmatpush1.bf16.msra.mxu0 %v642_v33 }
  0x37   :  { %490 = vmatpush1.bf16.msra.mxu1 %v643_v34  ;;  %369 = vmatprep.subr.bf16.mxu0 %v660_v0 }
  0x38   :  { %491 = vmatprep.subr.bf16.mxu1 %v660_v0 }
  0x3a   :  { %370 = vmatpush1.bf16.msra.mxu0 %v644_v35 }
  0x3b   :  { %492 = vmatpush1.bf16.msra.mxu1 %v645_v36  ;;  %371 = vmatprep.subr.bf16.mxu0 %v660_v0 }
  0x3c   :  { %493 = vmatprep.subr.bf16.mxu1 %v660_v0 }
  0x3e   :  { %372 = vmatpush1.bf16.msra.mxu0 %v646_v37 }
  0x3f   :  { %494 = vmatpush1.bf16.msra.mxu1 %v647_v38  ;;  %373 = vmatprep.subr.bf16.mxu0 %v660_v0 }
  0x40   :  { %495 = vmatprep.subr.bf16.mxu1 %v660_v0 }
  0x42   :  { %374 = vmatpush1.bf16.msra.mxu0 %v648_v39 }
  0x43   :  { %496 = vmatpush1.bf16.msra.mxu1 %v649_v40  ;;  %375 = vmatprep.subr.bf16.mxu0 %v660_v0 }
  0x44   :  { %497 = vmatprep.subr.bf16.mxu1 %v660_v0 }
  0x46   :  { %376 = vmatpush1.bf16.msra.mxu0 %v650_v41 }
  0x47   :  { %498 = vmatpush1.bf16.msra.mxu1 %v651_v42  ;;  %377 = vmatprep.subr.bf16.mxu0 %v660_v0 }
  0x48   :  { %499 = vmatprep.subr.bf16.mxu1 %v660_v0 }
  0x4a   :  { %378 = vmatpush1.bf16.msra.mxu0 %v652_v43 }
  0x4b   :  { %500 = vmatpush1.bf16.msra.mxu1 %v653_v44  ;;  %379 = vmatprep.subr.bf16.mxu0 %v660_v0 }
  0x4c   :  { %501 = vmatprep.subr.bf16.mxu1 %v660_v0 }
  0x4e   :  { %380 = vmatpush1.bf16.msra.mxu0 %v359_v47 }
  0x4f   :  { %502 = vmatpush1.bf16.msra.mxu1 %v481_v48 }
  0x51   :  { %394 = vmatmul.mubr.bf16.vlgmr.msra.gmra.mrb[4].mxu0 %v787_v24 }
  0x52   :  { %516 = vmatmul.mubr.bf16.vlgmr.msra.gmra.mrb[4].mxu1 %v787_v24 }
  0x8c   :  { %v531_v59 = vpop.permute.xlu0 %530 }
  0x90   :  { %v536_v9 = vpop.permute.xlu0 %535 }
  0xfc   :  { %v153_v49 = vpop.f32.mrb[0].mxu0 }
  0xfd   :  { %v273_v50 = vpop.f32.mrb[0].mxu1  ;;  %v155_v51 = vpop.f32.mrb[1].mxu0 }
  0xfe   :  { %v280_v52 = vmax.f32 %v153_v49, %v273_v50  ;;  %v275_v53 = vpop.f32.mrb[1].mxu1  ;;  %v156_v54 = vpop.f32.mrb[2].mxu0 }
  0xff   :  { %v276_v55 = vpop.f32.mrb[2].mxu1  ;;  %v158_v56 = vpop.f32.mrb[3].mxu0 }
 0x100   :  { %v281_v57 = vmax.f32 %v156_v54, %v276_v55  ;;  %v278_v58 = vpop.f32.mrb[3].mxu1 }
 0x124   :  { %v395_v60 = vpop.f32.mrb[4].mxu0 }
 0x125   :  { %v402_v61 = vmax.f32 %v280_v52, %v395_v60  ;;  %v517_v62 = vpop.f32.mrb[4].mxu1  ;;  %v397_v63 = vpop.f32.mrb[5].mxu0 }
 0x126   :  { %v519_v0 = vpop.f32.mrb[5].mxu1  ;;  %v398_v1 = vpop.f32.mrb[6].mxu0 }
 0x127   :  { %v524_v2 = vmax.f32 %v402_v61, %v517_v62  ;;  %v403_v3 = vmax.f32 %v281_v57, %v398_v1  ;;  %v520_v4 = vpop.f32.mrb[6].mxu1  ;;  %v400_v5 = vpop.f32.mrb[7].mxu0 }
 0x128   :  { %v522_v6 = vpop.f32.mrb[7].mxu1 }
 0x129   :  { %v538_v7 = vadd.f32 %v531_v59, %v524_v2  ;;  %v525_v8 = vmax.f32 %v403_v3, %v520_v4 }
 0x12b   :  { %v539_v10 = vadd.f32 %v536_v9, %v525_v8  ;;  %656 = vtanh.f32 %v538_v7 }
 0x12d   :  { %658 = vtanh.f32 %v539_v10 }
 0x135   :  { %v657_v11 = vpop.eup %656 }
 0x137   :  { %v659_v12 = vpop.eup %658 }
 0x138   :  { %v609_v13 = vpack.c.bf16 %v659_v12, %v657_v11 }
 0x13a   :  { %610 = vst [vmem:[%s892_s6] sm:$0xff] %v609_v13  }

// kernel: lenet5_bn5_forward.5
= control target key start
LH: loop header
LB: loop body
LE: loop exit
PB: predicated region body
PF: predicated region fallthrough
CT: control target
= control target key end

     0   :  { %v789_v1 = vmov 0   ;;  %v98_v20 = vlaneseq  ;;  %v790_v25 = vmov 1966171168   ;;  %vm264_vm0 = vcmask 130048   ;;  %s1009_s0 = inlined_call_operand.vmem [shape: bf16[2,400], index: 0, kind: input, shape index: {}]   ;;  %s1010_s1 = inlined_call_operand.vmem [shape: bf16[400,128], index: 1, kind: input, shape index: {}]   ;;  %s1011_s2 = inlined_call_operand.vmem [shape: f32[1,128], index: 2, kind: input, shape index: {}]   ;;  %s1012_s3 = inlined_call_operand.vmem [shape: bf16[128,128], index: 3, kind: input, shape index: {}]   ;;  %s1013_s4 = inlined_call_operand.vmem [shape: f32[1,128], index: 4, kind: input, shape index: {}]   ;;  %s1014_s5 = inlined_call_operand.vmem [shape: bf16[128,128], index: 5, kind: input, shape index: {}]   ;;  %s1015_s6 = inlined_call_operand.vmem [shape: f32[1,128], index: 6, kind: input, shape index: {}]   ;;  %s1016_s7 = inlined_call_operand.hbm [shape: f32[2,128], index: 7, kind: output, shape index: {}]  }
   0x1   :  { %v720_v0 = vld [vmem:[%s1010_s1 + $0x40] sm:$0xff]   ;;  %308 = vmatprep.subr.bf16.mxu1 %v789_v1  ;;  %v723_v4 = vld [vmem:[%s1010_s1 + $0x48] sm:$0xff]   ;;  %v726_v7 = vld [vmem:[%s1010_s1 + $0x50] sm:$0xff]   ;;  %v96_v26 = vunpack.c.l.s4 %v790_v25  ;;  %v791_v38 = vmov 0.0  }
   0x2   :  { %v721_v2 = vld [vmem:[%s1010_s1 + $0x80] sm:$0xff]   ;;  %635 = vmatprep.subr.bf16.mxu0 %v720_v0  ;;  %v724_v5 = vld [vmem:[%s1010_s1 + $0x88] sm:$0xff]   ;;  %v727_v8 = vld [vmem:[%s1010_s1 + $0x90] sm:$0xff]   ;;  %v99_v27 = vshrl.u32 %v98_v20, 7 }
   0x3   :  { %v722_v3 = vld [vmem:[%s1010_s1] sm:$0xff]   ;;  %309 = vmatpush1.bf16.msra.mxu1 %v721_v2  ;;  %v725_v6 = vld [vmem:[%s1010_s1 + $0x8] sm:$0xff]   ;;  %v728_v9 = vld [vmem:[%s1010_s1 + $0x10] sm:$0xff]   ;;  %v97_v30 = vunpack.c.0.s8 %v96_v26 }
   0x4   :  { %636 = vmatpush3.bf16.msra.mxu0 %v722_v3  ;;  %310 = vmatprep.subr.bf16.mxu1 %v789_v1  ;;  %v729_v10 = vld [vmem:[%s1010_s1 + $0x58] sm:$0xff]   ;;  %v732_v13 = vld [vmem:[%s1010_s1 + $0x60] sm:$0xff]   ;;  %v735_v16 = vld [vmem:[%s1010_s1 + $0x68] sm:$0xff]  }
   0x5   :  { %637 = vmatprep.subr.bf16.mxu0 %v723_v4  ;;  %v730_v11 = vld [vmem:[%s1010_s1 + $0x98] sm:$0xff]   ;;  %v733_v14 = vld [vmem:[%s1010_s1 + $0xa0] sm:$0xff]   ;;  %v736_v17 = vld [vmem:[%s1010_s1 + $0xa8] sm:$0xff]   ;;  %v100_v32 = vsub.s32 %v97_v30, %v99_v27 }
   0x6   :  { %v731_v12 = vld [vmem:[%s1010_s1 + $0x18] sm:$0xff]   ;;  %v734_v15 = vld [vmem:[%s1010_s1 + $0x20] sm:$0xff]   ;;  %v737_v18 = vld [vmem:[%s1010_s1 + $0x28] sm:$0xff]  }
   0x7   :  { %311 = vmatpush1.bf16.msra.mxu1 %v724_v5  ;;  %v738_v19 = vld [vmem:[%s1010_s1 + $0x70] sm:$0xff]   ;;  %v590_v23 = vld.sshfl [vmem:[%s1009_s0] sm:$0x33 pattern:$0x75316420]  ;;  %v741_v24 = vld [vmem:[%s1010_s1 + $0x78] sm:$0xff]  }
   0x8   :  { %638 = vmatpush3.bf16.msra.mxu0 %v725_v6  ;;  %312 = vmatprep.subr.bf16.mxu1 %v789_v1  ;;  %v739_v21 = vld [vmem:[%s1010_s1 + $0xb0] sm:$0xff]   ;;  %v742_v28 = vld [vmem:[%s1010_s1 + $0xb8] sm:$0xff]   ;;  %v94_v29 = vcombine.high %v590_v23, %v590_v23  ;;  %v744_v33 = vld [vmem:[%s1010_s1 + $0xc0] sm:$0xff]   ;;  %v101_v36 = vrot.slane %v590_v23, %v100_v32 }
   0x9   :  { %639 = vmatprep.subr.bf16.mxu0 %v726_v7  ;;  %v740_v22 = vld [vmem:[%s1010_s1 + $0x30] sm:$0xff]   ;;  %v743_v31 = vld [vmem:[%s1010_s1 + $0x38] sm:$0xff]   ;;  %v745_v34 = vld [vmem:[%s1012_s3] sm:$0xff]  }
   0xa   :  { %v108_v35 = vrot.slane %v94_v29, %v100_v32  ;;  %v109_v39 = vcombine.high %v101_v36, %v101_v36  ;;  %v746_v40 = vld [vmem:[%s1012_s3 + $0x8] sm:$0xff]  }
   0xb   :  { %313 = vmatpush1.bf16.msra.mxu1 %v727_v8 }
   0xc   :  { %640 = vmatpush3.bf16.msra.mxu0 %v728_v9  ;;  %314 = vmatprep.subr.bf16.mxu1 %v789_v1  ;;  %v110_v37 = vcombine.high %v108_v35, %v108_v35 }
   0xd   :  { %641 = vmatprep.subr.bf16.mxu0 %v729_v10  ;;  %300 = vmatprep.mubr.bf16.mxu0 %v108_v35 }
   0xe   :  { %616 = vmatprep.mubr.msk.bf16.mxu1 %vm264_vm0, %v110_v37 }
   0xf   :  { %315 = vmatpush1.bf16.msra.mxu1 %v730_v11 }
  0x10   :  { %642 = vmatpush3.bf16.msra.mxu0 %v731_v12  ;;  %316 = vmatprep.subr.bf16.mxu1 %v789_v1 }
  0x11   :  { %643 = vmatprep.subr.bf16.mxu0 %v732_v13 }
  0x13   :  { %317 = vmatpush1.bf16.msra.mxu1 %v733_v14 }
  0x14   :  { %644 = vmatpush3.bf16.msra.mxu0 %v734_v15  ;;  %318 = vmatprep.subr.bf16.mxu1 %v789_v1 }
  0x15   :  { %645 = vmatprep.subr.bf16.mxu0 %v735_v16 }
  0x17   :  { %319 = vmatpush1.bf16.msra.mxu1 %v736_v17 }
  0x18   :  { %646 = vmatpush3.bf16.msra.mxu0 %v737_v18  ;;  %320 = vmatprep.subr.bf16.mxu1 %v789_v1 }
  0x19   :  { %647 = vmatprep.subr.bf16.mxu0 %v738_v19 }
  0x1b   :  { %321 = vmatpush1.bf16.msra.mxu1 %v739_v21 }
  0x1c   :  { %648 = vmatpush3.bf16.msra.mxu0 %v740_v22  ;;  %322 = vmatprep.subr.bf16.mxu1 %v789_v1 }
  0x1d   :  { %649 = vmatprep.subr.bf16.mxu0 %v741_v24 }
  0x1f   :  { %323 = vmatpush1.bf16.msra.mxu1 %v742_v28 }
  0x20   :  { %650 = vmatpush3.bf16.msra.mxu0 %v743_v31  ;;  %324 = vmatprep.subr.bf16.mxu1 %v789_v1 }
  0x21   :  { %675 = vmatprep.subr.bf16.mxu0 %v791_v38 }
  0x23   :  { %301 = vmatmul.mubr.bf16.vlgmr.msra.gmra.mrb[0].mxu0 %v101_v36  ;;  %325 = vmatpush1.bf16.msra.mxu1 %v744_v33 }
  0x24   :  { %676 = vmatpush3.bf16.msra.mxu0 %v745_v34  ;;  %695 = vmatprep.subr.bf16.mxu1 %v791_v38 }
  0x25   :  { %677 = vmatprep.subr.bf16.mxu0 %v791_v38 }
  0x26   :  { %12 = vsyncpa [#allocation3], 0  ;;  %341 = vmatmul.mubr.bf16.vlgmr.msra.gmra.mrb[0].mxu1 %v109_v39  ;;  %v747_v41 = vld [vmem:[%s1012_s3 + $0x10] sm:$0xff]   ;;  %v748_v42 = vld [vmem:[%s1012_s3 + $0x18] sm:$0xff]   ;;  %vm792_vm1 = vmmov 0   ;;  %s793_s16 = smov [#allocation2]  }
  0x27   :  { %v749_v43 = vld [vmem:[%s1012_s3 + $0x20] sm:$0xff]   ;;  %v750_v44 = vld [vmem:[%s1012_s3 + $0x28] sm:$0xff]   ;;  %v751_v45 = vld [vmem:[%s1012_s3 + $0x30] sm:$0xff]   ;;  %691 = vmatprep.mubr.msk.bf16.mxu0 %vm792_vm1, %v791_v38  ;;  %711 = vmatprep.mubr.msk.bf16.mxu1 %vm792_vm1, %v791_v38 }
  0x28   :  { %678 = vmatpush3.bf16.msra.mxu0 %v746_v40  ;;  %v752_v46 = vld [vmem:[%s1012_s3 + $0x38] sm:$0xff]   ;;  %v753_v47 = vld [vmem:[%s1014_s5] sm:$0xff]   ;;  %v754_v48 = vld [vmem:[%s1014_s5 + $0x8] sm:$0xff]  }
  0x29   :  { %679 = vmatprep.subr.bf16.mxu0 %v791_v38  ;;  %696 = vmatpush3.bf16.msra.mxu1 %v753_v47  ;;  %v755_v49 = vld [vmem:[%s1014_s5 + $0x10] sm:$0xff]   ;;  %v756_v50 = vld [vmem:[%s1014_s5 + $0x18] sm:$0xff]   ;;  %v589_v53 = vld [vmem:[%s1011_s2] ss:$0 sm:$0xff] }
  0x2a   :  { %697 = vmatprep.subr.bf16.mxu1 %v791_v38  ;;  %v757_v1 = vld [vmem:[%s1014_s5 + $0x20] sm:$0xff]   ;;  %v758_v2 = vld [vmem:[%s1014_s5 + $0x28] sm:$0xff]   ;;  %v759_v3 = vld [vmem:[%s1014_s5 + $0x30] sm:$0xff]  }
  0x2b   :  { %v760_v4 = vld [vmem:[%s1014_s5 + $0x38] sm:$0xff]   ;;  %v617_v5 = vld [vmem:[%s1013_s4] ss:$0 sm:$0xff]  ;;  %s581_s5 = sshll.u32 %s793_s16, 4  ;;  %s582_s5 = int_to_ptr.vmem [resolvable:$true] %s581_s5 }
  0x2c   :  { %680 = vmatpush3.bf16.msra.mxu0 %v747_v41  ;;  %v626_v13 = vld [vmem:[%s1015_s6] ss:$0 sm:$0xff]  ;;  %s765_s4 = scalar_lea.vmem %s582_s5, 32  ;;  %p770_p1 = scmp.lt.s32.totalorder %s582_s5, %s582_s5 }
  0x2d   :  { %681 = vmatprep.subr.bf16.mxu0 %v791_v38  ;;  %698 = vmatpush3.bf16.msra.mxu1 %v754_v48  ;;  %p766_p0 = scmp.ne.s32.totalorder %s582_s5, %s765_s4  ;;  %p771_p2 = scmp.lt.s32.totalorder %s765_s4, %s765_s4 }
  0x2e   :  { %699 = vmatprep.subr.bf16.mxu1 %v791_v38 }
  0x2f   :  { %p772_p3 = por %p771_p2, %p770_p1 }
  0x30   :  { %682 = vmatpush3.bf16.msra.mxu0 %v748_v42 }
  0x31   :  { %683 = vmatprep.subr.bf16.mxu0 %v791_v38  ;;  %700 = vmatpush3.bf16.msra.mxu1 %v755_v49  ;;  %p773_p4 = pnand %p772_p3, %p766_p0 }
  0x32   :  { %701 = vmatprep.subr.bf16.mxu1 %v791_v38 }
  0x34   :  { %684 = vmatpush3.bf16.msra.mxu0 %v749_v43 }
  0x35   :  { %685 = vmatprep.subr.bf16.mxu0 %v791_v38  ;;  %702 = vmatpush3.bf16.msra.mxu1 %v756_v50 }
  0x36   :  { %703 = vmatprep.subr.bf16.mxu1 %v791_v38 }
  0x38   :  { %686 = vmatpush3.bf16.msra.mxu0 %v750_v44 }
  0x39   :  { %687 = vmatprep.subr.bf16.mxu0 %v791_v38  ;;  %704 = vmatpush3.bf16.msra.mxu1 %v757_v1 }
  0x3a   :  { %705 = vmatprep.subr.bf16.mxu1 %v791_v38 }
  0x3c   :  { %688 = vmatpush3.bf16.msra.mxu0 %v751_v45 }
  0x3d   :  { %689 = vmatprep.subr.bf16.mxu0 %v791_v38  ;;  %706 = vmatpush3.bf16.msra.mxu1 %v758_v2 }
  0x3e   :  { %707 = vmatprep.subr.bf16.mxu1 %v791_v38 }
  0x40   :  { %690 = vmatpush3.bf16.msra.mxu0 %v752_v46 }
  0x41   :  { %708 = vmatpush3.bf16.msra.mxu1 %v759_v3 }
  0x42   :  { %709 = vmatprep.subr.bf16.mxu1 %v791_v38 }
  0x45   :  { %710 = vmatpush3.bf16.msra.mxu1 %v760_v4 }
  0xf6   :  { %v651_v51 = vpop.f32.mrb[0].mxu0 }
  0xf7   :  { %v652_v52 = vpop.f32.mrb[1].mxu0 }
  0xf8   :  { %v653_v54 = vadd.f32 %v652_v52, %v651_v51  ;;  %v654_v55 = vpop.f32.mrb[2].mxu0 }
  0xf9   :  { %v655_v56 = vpop.f32.mrb[3].mxu0  ;;  %v342_v57 = vpop.f32.mrb[0].mxu1 }
  0xfa   :  { %v303_v58 = vadd.f32 %v653_v54, %v589_v53  ;;  %v344_v59 = vpop.f32.mrb[1].mxu1 }
  0xfb   :  { %v345_v60 = vpop.f32.mrb[2].mxu1 }
  0xfc   :  { %v343_v61 = vadd.f32 %v342_v57, %v303_v58  ;;  %v346_v62 = vpop.f32.mrb[3].mxu1 }
  0xfe   :  { %761 = vtanh.f32 %v343_v61 }
 0x108   :  { %v762_v63 = vpop.eup %761 }
 0x109   :  { %v349_v0 = vpack.c.bf16 %v762_v63, %v762_v63 }
 0x10b   :  { %692 = vmatmul.mubr.bf16.vlgmr.msra.gmra.mrb[4].mxu0 %v349_v0 }
 0x1de   :  { %v455_v6 = vpop.f32.mrb[4].mxu0 }
 0x1df   :  { %v456_v7 = vadd.f32 %v617_v5, %v455_v6  ;;  %v693_v8 = vpop.f32.mrb[5].mxu0 }
 0x1e0   :  { %v458_v9 = vpop.f32.mrb[6].mxu0 }
 0x1e1   :  { %763 = vtanh.f32 %v456_v7  ;;  %v694_v10 = vpop.f32.mrb[7].mxu0 }
 0x1eb   :  { %v764_v11 = vpop.eup %763 }
 0x1ec   :  { %v462_v12 = vpack.c.bf16 %v764_v11, %v764_v11 }
 0x1ee   :  { %712 = vmatmul.mubr.bf16.vlgmr.msra.gmra.mrb[4].mxu1 %v462_v12 }
 0x2c1   :  { %v568_v14 = vpop.f32.mrb[4].mxu1 }
 0x2c2   :  { %v569_v15 = vadd.f32 %v626_v13, %v568_v14  ;;  %v713_v16 = vpop.f32.mrb[5].mxu1 }
 0x2c3   :  { %v571_v17 = vpop.f32.mrb[6].mxu1 }
 0x2c4   :  { %574 = vst [vmem:[#allocation2] sm:$0x3] %v569_v15  ;;  %v714_v18 = vpop.f32.mrb[7].mxu1 }
 0x2c5   :  { %776 = shalt.err (!%p773_p4)
}
 0x2c6   :  { %s777_s6 = scalar_lea.hbm %s1016_s7, 32 }
 0x2c7   :  { %p778_p5 = scmp.ne.s32.totalorder %s1016_s7, %s777_s6  ;;  %p781_p6 = scmp.lt.u32.totalorder %s777_s6, %s1016_s7 }
 0x2c9   :  { %p783_p7 = pnand %p781_p6, %p778_p5 }
 0x2cb   :  { %786 = shalt.err (!%p783_p7)
}
 0x2cc   :  { %584 = dma.vmem_to_hbm [thread:$0]  %s582_s5, 32, %s1016_s7, [#allocation3]  }
 0x2cd   :  { %787 = dma.done.wait [#allocation3], 32  }
 0x2ce   :  { %788 = vsyncadd [#allocation3], 4294967264 }
 0x2cf   :  { %588 = vsyncpa [#allocation3], 1 }

</bundles_post_ra>
